<compile_context>
chip_gen: v7x
topology: tpu7x:2x2x1
jax: 0.10.0
libtpu: 0.0.40
codegen_flags: <defaults>
</compile_context>

<pallas_src>
import functools

import jax
import jax.numpy as jnp
from jax.experimental import pallas as pl
from jax.experimental.pallas import tpu as pltpu


def _make_divisible(v, divisor, min_value=None):
    if min_value is None:
        min_value = divisor
    new_v = max(min_value, int(v + divisor / 2) // divisor * divisor)
    if new_v < 0.9 * v:
        new_v += divisor
    return new_v


# ------------------------------ Pallas kernel ------------------------------

def _se_kernel(x_ref, w1_ref, b1_ref, w2_ref, b2_ref, o_ref, *, inv_hw):
    # x:  (B_TILE, C, HW)   PyTorch channel-major layout, HW on the lane axis
    # w1: (C, Cr)  b1: (1, Cr)      conv_reduce (1x1 conv == matmul)
    # w2: (Cr, C)  b2: (1, C)       conv_expand
    x = x_ref[...]
    pooled = jnp.sum(x, axis=-1) * inv_hw                         # (B, C) avg pool
    r = jnp.dot(pooled, w1_ref[...],
                preferred_element_type=jnp.float32) + b1_ref[...]  # (B, Cr)
    r = jnp.maximum(r, 0.0)                                        # act1 = ReLU
    e = jnp.dot(r, w2_ref[...],
                preferred_element_type=jnp.float32) + b2_ref[...]  # (B, C)
    gate = jnp.clip(e + 3.0, 0.0, 6.0) * (1.0 / 6.0)               # hard_sigmoid
    o_ref[...] = x * gate[:, :, None]                              # broadcast (B,C,1)


# ------------------------------ wrapper ------------------------------

def _choose_b_tile(n, c, hw, target_bytes=2 * 1024 * 1024):
    """Batch elements per grid step: aim for ~1-2 MiB input tiles, keep >=2 steps."""
    per_elem = c * hw * 4  # fp32 bytes of one batch element
    b = max(1, min(n, target_bytes // per_elem))
    if n >= 2:
        # keep at least 2 (and even-sized) grid steps so v7x's two TCs both get work
        b = min(b, max(1, n // 2))
    while n % b != 0:      # exact tiling -> no partial blocks
        b -= 1
    return b


def squeeze_excite(x_nchw, params):
    """SqueezeExcite forward. x_nchw: (N, C, H, W) fp32, matches PyTorch layout."""
    N, C, H, W = x_nchw.shape
    HW = H * W
    Cr = params["w1"].shape[1]

    # NCHW -> (N, C, HW): pure reshape (same memory), NO transpose, no extra
    # HBM round-trips.  HW lands on the 128-lane axis -> lane-dense stores.
    x = x_nchw.reshape(N, C, HW)

    b_tile = _choose_b_tile(N, C, HW)
    grid = (N // b_tile,)

    flops = 4 * N * C * Cr + 3 * N * C * HW                      # matmuls + pool/gate
    bytes_accessed = 2 * N * C * HW * 4 + (2 * C * Cr + Cr + C) * 4

    y = pl.pallas_call(
        functools.partial(_se_kernel, inv_hw=1.0 / float(HW)),
        out_shape=jax.ShapeDtypeStruct((N, C, HW), jnp.float32),
        grid=grid,
        in_specs=[
            pl.BlockSpec((b_tile, C, HW), lambda n: (n, 0, 0)),   # batch tile
            pl.BlockSpec((C, Cr), lambda n: (0, 0)),              # weights resident
            pl.BlockSpec((1, Cr), lambda n: (0, 0)),
            pl.BlockSpec((Cr, C), lambda n: (0, 0)),
            pl.BlockSpec((1, C), lambda n: (0, 0)),
        ],
        out_specs=pl.BlockSpec((b_tile, C, HW), lambda n: (n, 0, 0)),
        compiler_params=pltpu.CompilerParams(
            dimension_semantics=("parallel",),   # batch tiles -> both TCs on v7x
        ),
        cost_estimate=pl.CostEstimate(
            flops=flops, transcendentals=0, bytes_accessed=bytes_accessed),
    )(x,
      params["w1"], params["b1"].reshape(1, Cr),
      params["w2"], params["b2"].reshape(1, C))

    # (N, C, HW) -> NCHW: again a free reshape.
    return y.reshape(N, C, H, W)


# ------------------------------ reference & params ------------------------------

def squeeze_excite_ref(x_nchw, params):
    # Pure-JAX reference mirroring the PyTorch module (NCHW semantics).
    pooled = jnp.mean(x_nchw, axis=(2, 3))                             # (N, C)
    r = jnp.maximum(pooled @ params["w1"] + params["b1"], 0.0)          # (N, Cr)
    e = r @ params["w2"] + params["b2"]                                 # (N, C)
    gate = jnp.clip(e + 3.0, 0.0, 6.0) / 6.0
    return x_nchw * gate[:, :, None, None]


def init_se_params(key, in_chs, se_ratio=0.25, divisor=4):
    reduced = _make_divisible(in_chs * se_ratio, divisor)
    k1, k2, k3, k4 = jax.random.split(key, 4)
    return dict(
        w1=jax.random.normal(k1, (in_chs, reduced), jnp.float32) * 0.1,
        b1=jax.random.normal(k2, (reduced,), jnp.float32) * 0.1,
        w2=jax.random.normal(k3, (reduced, in_chs), jnp.float32) * 0.1,
        b2=jax.random.normal(k4, (in_chs,), jnp.float32) * 0.1,
    )


if __name__ == "__main__":
    # Shapes consistent with GhostNet usage: SqueezeExcite(in_chs=72, se_ratio=0.25)
    # on a (2, 72, 16, 16) NCHW activation (reduced channels = 20).
    key = jax.random.PRNGKey(0)
    kx, kp = jax.random.split(key)
    N, C, H, W = 2, 72, 16, 16
    x = jax.random.normal(kx, (N, C, H, W), jnp.float32)
    params = init_se_params(kp, C, se_ratio=0.25)

    y = squeeze_excite(x, params)
    y = jax.block_until_ready(y)
    assert y.shape == (N, C, H, W), y.shape

    y_ref = squeeze_excite_ref(x, params)
    assert jnp.allclose(y, y_ref, rtol=1e-5, atol=1e-5), "mismatch vs reference"

    print("KERNEL_OK")
</pallas_src>

<mosaic_0001>
module attributes {stable_mosaic.version = 11 : i64} {
  func.func @_se_kernel(%arg0: i32, %arg1: memref<1x72x256xf32, #tpu.memory_space<vmem>>, %arg2: memref<72x20xf32, #tpu.memory_space<vmem>>, %arg3: memref<1x20xf32, #tpu.memory_space<vmem>>, %arg4: memref<20x72xf32, #tpu.memory_space<vmem>>, %arg5: memref<1x72xf32, #tpu.memory_space<vmem>>, %arg6: memref<1x72x256xf32, #tpu.memory_space<vmem>>) attributes {dimension_semantics = [#tpu.dimension_semantics<parallel>], iteration_bounds = array<i64: 2>, scalar_prefetch = 0 : i64, scratch_operands = 0 : i64, tpu.core_type = #tpu.core_type<tc>, window_params = [{transform_indices = @transform_0, window_bounds = array<i64: 1, 72, 256>}, {pipeline_mode = #tpu.pipeline_mode<synchronous>, transform_indices = @transform_1, window_bounds = array<i64: 72, 20>}, {pipeline_mode = #tpu.pipeline_mode<synchronous>, transform_indices = @transform_2, window_bounds = array<i64: 1, 20>}, {pipeline_mode = #tpu.pipeline_mode<synchronous>, transform_indices = @transform_3, window_bounds = array<i64: 20, 72>}, {pipeline_mode = #tpu.pipeline_mode<synchronous>, transform_indices = @transform_4, window_bounds = array<i64: 1, 72>}, {transform_indices = @transform_5, window_bounds = array<i64: 1, 72, 256>}]} {
    %c0 = arith.constant 0 : index
    %c0_0 = arith.constant 0 : index
    %c0_1 = arith.constant 0 : index
    %0 = vector.load %arg1[%c0, %c0_0, %c0_1] : memref<1x72x256xf32, #tpu.memory_space<vmem>>, vector<1x72x256xf32>
    %cst = arith.constant dense<0.000000e+00> : vector<1x72xf32>
    %1 = vector.multi_reduction <add>, %0, %cst [2] : vector<1x72x256xf32> to vector<1x72xf32>
    %cst_2 = arith.constant 3.906250e-03 : f32
    %2 = vector.broadcast %cst_2 : f32 to vector<1x72xf32>
    %3 = arith.mulf %1, %2 : vector<1x72xf32>
    %c0_3 = arith.constant 0 : index
    %c0_4 = arith.constant 0 : index
    %4 = vector.load %arg2[%c0_3, %c0_4] : memref<72x20xf32, #tpu.memory_space<vmem>>, vector<72x20xf32>
    %cst_5 = arith.constant dense<0.000000e+00> : vector<1x20xf32>
    %5 = tpu.matmul %3, %4, %cst_5 {dimension_numbers = #tpu.dot_dimension_numbers<[1], [0], [0], [1], [0, 0, 1, 1], [], []>} : vector<1x72xf32>, vector<72x20xf32>, vector<1x20xf32> -> vector<1x20xf32>
    %c0_6 = arith.constant 0 : index
    %c0_7 = arith.constant 0 : index
    %6 = vector.load %arg3[%c0_6, %c0_7] : memref<1x20xf32, #tpu.memory_space<vmem>>, vector<1x20xf32>
    %7 = arith.addf %5, %6 : vector<1x20xf32>
    %cst_8 = arith.constant 0.000000e+00 : f32
    %8 = vector.broadcast %cst_8 : f32 to vector<1x20xf32>
    %9 = arith.maximumf %7, %8 : vector<1x20xf32>
    %c0_9 = arith.constant 0 : index
    %c0_10 = arith.constant 0 : index
    %10 = vector.load %arg4[%c0_9, %c0_10] : memref<20x72xf32, #tpu.memory_space<vmem>>, vector<20x72xf32>
    %cst_11 = arith.constant dense<0.000000e+00> : vector<1x72xf32>
    %11 = tpu.matmul %9, %10, %cst_11 {dimension_numbers = #tpu.dot_dimension_numbers<[1], [0], [0], [1], [0, 0, 1, 1], [], []>} : vector<1x20xf32>, vector<20x72xf32>, vector<1x72xf32> -> vector<1x72xf32>
    %c0_12 = arith.constant 0 : index
    %c0_13 = arith.constant 0 : index
    %12 = vector.load %arg5[%c0_12, %c0_13] : memref<1x72xf32, #tpu.memory_space<vmem>>, vector<1x72xf32>
    %13 = arith.addf %11, %12 : vector<1x72xf32>
    %cst_14 = arith.constant 3.000000e+00 : f32
    %14 = vector.broadcast %cst_14 : f32 to vector<1x72xf32>
    %15 = arith.addf %13, %14 : vector<1x72xf32>
    %cst_15 = arith.constant 0.000000e+00 : f32
    %cst_16 = arith.constant 6.000000e+00 : f32
    %16 = vector.broadcast %cst_15 : f32 to vector<1x72xf32>
    %17 = arith.maximumf %16, %15 : vector<1x72xf32>
    %18 = vector.broadcast %cst_16 : f32 to vector<1x72xf32>
    %19 = arith.minimumf %18, %17 : vector<1x72xf32>
    %cst_17 = arith.constant 0.166666672 : f32
    %20 = vector.broadcast %cst_17 : f32 to vector<1x72xf32>
    %21 = arith.mulf %19, %20 : vector<1x72xf32>
    %22 = vector.shape_cast %21 : vector<1x72xf32> to vector<1x72x1xf32>
    %23 = vector.broadcast %22 : vector<1x72x1xf32> to vector<1x72x256xf32>
    %24 = arith.mulf %0, %23 : vector<1x72x256xf32>
    %c0_18 = arith.constant 0 : index
    %c0_19 = arith.constant 0 : index
    %c0_20 = arith.constant 0 : index
    %25 = vector.load %arg6[%c0_18, %c0_19, %c0_20] : memref<1x72x256xf32, #tpu.memory_space<vmem>>, vector<1x72x256xf32>
    tpu.vector_store %arg6[%c0_18, %c0_19, %c0_20], %24 {strides = array<i32>} : memref<1x72x256xf32, #tpu.memory_space<vmem>>, vector<1x72x256xf32>,
    return
  }
  func.func @transform_0(%arg0: i32) -> (i32, i32, i32) {
    %c0_i32 = arith.constant 0 : i32
    %c0_i32_0 = arith.constant 0 : i32
    %c0_i32_1 = arith.constant 0 : i32
    return %arg0, %c0_i32, %c0_i32_0 : i32, i32, i32
  }
  func.func @transform_1(%arg0: i32) -> (i32, i32) {
    %c0_i32 = arith.constant 0 : i32
    %c0_i32_0 = arith.constant 0 : i32
    %c0_i32_1 = arith.constant 0 : i32
    return %c0_i32, %c0_i32_0 : i32, i32
  }
  func.func @transform_2(%arg0: i32) -> (i32, i32) {
    %c0_i32 = arith.constant 0 : i32
    %c0_i32_0 = arith.constant 0 : i32
    %c0_i32_1 = arith.constant 0 : i32
    return %c0_i32, %c0_i32_0 : i32, i32
  }
  func.func @transform_3(%arg0: i32) -> (i32, i32) {
    %c0_i32 = arith.constant 0 : i32
    %c0_i32_0 = arith.constant 0 : i32
    %c0_i32_1 = arith.constant 0 : i32
    return %c0_i32, %c0_i32_0 : i32, i32
  }
  func.func @transform_4(%arg0: i32) -> (i32, i32) {
    %c0_i32 = arith.constant 0 : i32
    %c0_i32_0 = arith.constant 0 : i32
    %c0_i32_1 = arith.constant 0 : i32
    return %c0_i32, %c0_i32_0 : i32, i32
  }
  func.func @transform_5(%arg0: i32) -> (i32, i32, i32) {
    %c0_i32 = arith.constant 0 : i32
    %c0_i32_0 = arith.constant 0 : i32
    %c0_i32_1 = arith.constant 0 : i32
    return %arg0, %c0_i32, %c0_i32_0 : i32, i32, i32
  }
}

</mosaic_0001>

<bundles_post_ra>
// kernel: tpu_custom_call.1
= control target key start
LH: loop header
LB: loop body
LE: loop exit
PB: predicated region body
PF: predicated region fallthrough
CT: control target
= control target key end

     0   :  { %10 = vsyncpa [#allocation3], 0  ;;  %s1296_s0 = inlined_call_operand.hbm [shape: f32[2,72,256], index: 0, kind: input, shape index: {}]   ;;  %s1297_s1 = inlined_call_operand.vmem [shape: f32[72,20], index: 1, kind: input, shape index: {}]   ;;  %s1298_s2 = inlined_call_operand.vmem [shape: f32[1,20], index: 2, kind: input, shape index: {}]   ;;  %s1299_s3 = inlined_call_operand.vmem [shape: f32[20,72], index: 3, kind: input, shape index: {}]   ;;  %s1300_s4 = inlined_call_operand.vmem [shape: f32[1,72], index: 4, kind: input, shape index: {}]   ;;  %s1301_s5 = inlined_call_operand.hbm [shape: f32[2,72,256], index: 5, kind: output, shape index: {}]  }
   0x1   :  { %12 = vsyncpa [#allocation3 + $0x1], 0 }
   0x2   :  { %13 = vsyncpa [#allocation4], 0 }
   0x3   :  { %15 = vsyncpa [#allocation4 + $0x1], 0  ;;  %s964_s18 = smov 0   ;;  %s966_s19 = smov 0  }
   0x4   :  { %s968_s20 = smov 0   ;;  %s970_s21 = smov 0  }
   0x5 LB: > { %s985_s22 = sadd.s32 4294967295, %s923_s21   ;;  %s700_s23 = sadd.s32 4294967294, %s923_s21   ;;  %s923_s21 = sphi %s970_s21, %s1313_s21   ;;  %s919_s20 = sphi %s968_s20, %s1312_s20   ;;  %s915_s19 = sphi %s966_s19, %s1311_s19   ;;  %s911_s18 = sphi %s964_s18, %s1310_s18  }
   0x6   : > { %s989_s24 = sadd.s32 1, %s923_s21   ;;  %s28_s25 = sadd.s32 1, %s919_s20 }
   0x7   : > { %s25_s26 = ssub.s32 %s923_s21, %s989_s24  ;;  %p35_p0 = scmp.ne.s32.totalorder %s919_s20, %s915_s19 }
   0x8   : > { %p26_p1 = scmp.eq.s32.totalorder %s25_s26, 0  ;;  %p36_p2 = scmp.eq.s32.totalorder %s923_s21, 0 }
   0x9   : > { %p41_p3 = scmp.ne.s32.totalorder %s915_s19, %s911_s18  ;;  %p42_p4 = scmp.eq.s32.totalorder %s985_s22, 0 }
   0xa   : > { %s1001_s27 = scalar_select %p26_p1, %s919_s20, %s28_s25  }
   0xb   : > { %p37_p5 = por %p36_p2, %p35_p0  ;;  %p1003_p6 = por %p42_p4, %p41_p3 }
   0xc   : > { %p149_p7 = scmp.eq.s32.totalorder %s985_s22, 1  ;;  %p155_p8 = scmp.eq.s32.totalorder %s700_s23, 1 }
   0xd   : > { %p786_p10 = scmp.lt.s32.totalorder %s923_s21, 2  ;;  %s187_s6 = sand.u32 1, %s919_s20  }
   0xe   : > { %p1010_p11 = por %p149_p7, %p35_p0  ;;  %p1014_p12 = por %p155_p8, %p41_p3 }
   0xf   : > { %s771_s7 = smul.u32 2304, %s923_s21  ;;  %p1025_p13 = pnand %p786_p10, %p37_p5 }
  0x10   : > { %s1304_s29 = scalar_select %p1010_p11, 1, 0 }
  0x11   : > { %s1305_s30 = scalar_select %p1014_p12, 1, 0 }
  0x12   : > { %s770_s8 = smul.u32 144, %s187_s6  ;;  %s1023_s11 = scalar_lea.hbm %s1296_s0, %s771_s7 }
  0x13   : > { %s1031_s15 = scalar_lea.sflag [#allocation3], %s187_s6  ;;  %s827_s16 = scalar_lea.hbm %s1023_s11, 2304 }
  0x14   : > { %s191_s13 = scalar_lea.vmem [#allocation2], %s770_s8  ;;  %p828_p0 = scmp.ne.s32.totalorder %s1023_s11, %s827_s16 }
  0x15   : > { %s198_s14 = sshll.u32 %s191_s13, 4  ;;  %p829_p1 = pneg %p1025_p13  ;;  %s1029_s14 = int_to_ptr.vmem [resolvable:$true] %s198_s14 }
  0x16   : > { %s832_s25 = scalar_lea.hbm %s1296_s0, 4608  ;;  %p833_p4 = scmp.lt.u32.totalorder %s1023_s11, %s1296_s0 }
  0x17   : > { %p830_p2 = pnand %p829_p1, %p828_p0  ;;  %p834_p5 = scmp.lt.u32.totalorder %s832_s25, %s827_s16 }
  0x18   : > { %p836_p8 = scmp.lt.u32.totalorder %s827_s16, %s1023_s11 }
  0x19   : > { %p831_p3 = pneg %p830_p2  ;;  %p835_p7 = por %p834_p5, %p833_p4 }
  0x1b   : > { %p837_p10 = por %p836_p8, %p835_p7 }
  0x1d   : > { %p838_p9 = pnand %p837_p10, %p831_p3 }
  0x1f   : > { %841 = shalt.err (!%p838_p9)
}
  0x20   : > { %s842_s6 = scalar_lea.vmem %s1029_s14, 2304  ;;  %s925_s8 = smov [#allocation2]  }
  0x21   : > { %p843_p0 = scmp.ne.s32.totalorder %s1029_s14, %s842_s6  ;;  %s847_s9 = sshll.u32 %s925_s8, 4  ;;  %s848_s9 = int_to_ptr.vmem [resolvable:$false] %s847_s9 }
  0x22   : > { %s849_s10 = scalar_lea.vmem %s848_s9, 4608  ;;  %p850_p11 = scmp.lt.s32.totalorder %s1029_s14, %s848_s9 }
  0x23   : > { %p845_p2 = pnand %p843_p0, %p829_p1  ;;  %p851_p4 = scmp.lt.s32.totalorder %s849_s10, %s842_s6 }
  0x25   : > { %p846_p12 = pneg %p845_p2  ;;  %p852_p5 = por %p851_p4, %p850_p11 }
  0x27   : > { %p853_p7 = pnand %p852_p5, %p846_p12 }
  0x29   : > { %856 = shalt.err (!%p853_p7)
}
  0x2a   : > { %s926_s13 = smov 256   ;;  %s927_s16 = smov 16  }
  0x2b   : > { %781 = dma.hbm_to_vmem [thread:$0]  (!%p1025_p13), %s1023_s11, 2304, %s1029_s14, %s1031_s15, %s926_s13, %s926_s13, %s927_s16  }
  0x2c   : > { %p704_p9 = scmp.ge.s32.totalorder %s923_s21, 1  ;;  %p206_p1 = scmp.lt.s32.totalorder %s923_s21, 3 }
  0x2e   : > { %p207_p3 = pnand %p704_p9, %p206_p1 }
  0x2f   : > { %s1062_s17 = sand.u32 (!%p207_p3), 1, %s915_s19  }
  0x30   : > { %210 = sbr.rel (%p207_p3) target bundleno = 814 (0x32e), region = 40  ;;  %s213_s25 = scalar_lea.sflag (!%p207_p3), [#allocation3], %s1062_s17 }
  0x31   : > { %s772_s23 = smul.u32 (!%p207_p3), 144, %s1062_s17 }
  0x33   : > { %s1068_s26 = scalar_lea.vmem (!%p207_p3), [#allocation2], %s772_s23 }
  0x37   : > { %902 = dma.done.wait (%p1003_p6), %s213_s25, 2304  }
  0x38   : > { %904 = vsyncadd (%p1003_p6), %s213_s25, 4294964992  ;;  %v1075_v0 = vld [vmem:[%s1068_s26] sm:$0xff]  ;;  %v1078_v1 = vld [vmem:[%s1068_s26 + $0x8] sm:$0xff]  ;;  %v928_v30 = vmov 0.0|0.0   ;;  %v929_v41 = vmov 0.0   ;;  %vm930_vm0 = vmmov 0   ;;  %v316_v42 = vlaneseq }
  0x39   : > { %v1081_v2 = vld [vmem:[%s1068_s26 + $0x20] sm:$0xff]  ;;  %v261_v3 = vadd.f32 %v1078_v1, %v1075_v0  ;;  %v1086_v4 = vld [vmem:[%s1068_s26 + $0x28] sm:$0xff]  ;;  %v1089_v5 = vld [vmem:[%s1068_s26 + $0x10] sm:$0xff]  ;;  %755 = vmatprep.subr.bf16.mxu0 %v928_v30  ;;  %767 = vmatprep.subr.bf16.mxu1 %v928_v30  ;;  %vm327_vm1 = vcmask 130112   ;;  %vm334_vm2 = vcmask 195712   ;;  %vm341_vm3 = vcmask 261312  }
  0x3a   : > { %v1092_v6 = vld [vmem:[%s1068_s26 + $0x18] sm:$0xff]  ;;  %v267_v7 = vadd.f32 %v1086_v4, %v1081_v2  ;;  %v1097_v8 = vld [vmem:[%s1068_s26 + $0x30] sm:$0xff]  ;;  %v1107_v12 = vld [vmem:[%s1068_s26 + $0x40] sm:$0xff]  ;;  %743 = vmatprep.mubr.msk.f32.mxu0 %vm930_vm0, %v929_v41  ;;  %752 = vmatprep.mubr.msk.f32.mxu1 %vm930_vm0, %v929_v41  ;;  %v317_v43 = vand.u32 127, %v316_v42  ;;  %v1176_v44 = vshrl.u32 %v316_v42, 7  ;;  %vm348_vm4 = vcmask 326912  }
  0x3b   : > { %v1100_v9 = vld [vmem:[%s1068_s26 + $0x38] sm:$0xff]  ;;  %262 = vadd.xlane.f32.xlu0 %v261_v3  ;;  %v264_v10 = vadd.f32 %v1092_v6, %v1089_v5  ;;  %v1110_v13 = vld [vmem:[%s1068_s26 + $0x48] sm:$0xff]  ;;  %v1113_v14 = vld [vmem:[%s1068_s26 + $0x50] sm:$0xff]  ;;  %vm355_vm5 = vcmask 392512   ;;  %vm362_vm6 = vcmask 458112   ;;  %vm369_vm7 = vcmask 523712  }
  0x3c   : > { %268 = vadd.xlane.f32.xlu1 %v267_v7  ;;  %v270_v11 = vadd.f32 %v1100_v9, %v1097_v8  ;;  %v1116_v15 = vld [vmem:[%s1068_s26 + $0x58] sm:$0xff]  ;;  %v273_v16 = vadd.f32 %v1110_v13, %v1107_v12  ;;  %v1123_v18 = vld [vmem:[%s1068_s26 + $0x60] sm:$0xff]  ;;  %v1126_v19 = vld [vmem:[%s1068_s26 + $0x68] sm:$0xff]  ;;  %v322_v45 = vadd.s32 4294967288, %v317_v43  ;;  %v329_v47 = vadd.s32 4294967280, %v317_v43  ;;  %s1211_s28 = scalar_lea.vmem [#allocation5], %s772_s23 }
  0x3d   : > { %v276_v17 = vadd.f32 %v1116_v15, %v1113_v14  ;;  %v1129_v20 = vld [vmem:[%s1068_s26 + $0x70] sm:$0xff]  ;;  %v1132_v21 = vld [vmem:[%s1068_s26 + $0x78] sm:$0xff]  ;;  %v279_v22 = vadd.f32 %v1126_v19, %v1123_v18  ;;  %v1139_v24 = vld [vmem:[%s1068_s26 + $0x80] sm:$0xff]  ;;  %v336_v48 = vadd.s32 4294967272, %v317_v43  ;;  %v320_v50 = vsub.s32 %v317_v43, %v1176_v44  ;;  %s773_s23 = smul.u32 2304, %s985_s22  ;;  %s627_s11 = sshll.u32 %s1211_s28, 4  ;;  %s1248_s11 = int_to_ptr.vmem [resolvable:$true] %s627_s11 }
  0x3e   : > { %v282_v23 = vadd.f32 %v1132_v21, %v1129_v20  ;;  %v1142_v25 = vld [vmem:[%s1068_s26 + $0x88] sm:$0xff]  ;;  %v297_v27 = vld [vmem:[%s1297_s1] sm:$0xff]  ;;  %v299_v31 = vld [vmem:[%s1297_s1 + $0x10] sm:$0xff]  ;;  %v325_v52 = vsub.s32 %v322_v45, %v1176_v44  ;;  %v343_v53 = vadd.s32 4294967264, %v317_v43  ;;  %v332_v54 = vsub.s32 %v329_v47, %v1176_v44  ;;  %s614_s22 = scalar_lea.sflag [#allocation4], %s1062_s17  ;;  %s857_s7 = scalar_lea.vmem %s1248_s11, 2304 }
  0x3f   : > { %265 = vadd.xlane.f32.xlu0 %v264_v10  ;;  %v285_v26 = vadd.f32 %v1142_v25, %v1139_v24  ;;  %v298_v28 = vld [vmem:[%s1297_s1 + $0x8] sm:$0xff]  ;;  %v300_v32 = vld [vmem:[%s1297_s1 + $0x18] sm:$0xff]  ;;  %v301_v34 = vld [vmem:[%s1297_s1 + $0x20] sm:$0xff]  ;;  %v339_v57 = vsub.s32 %v336_v48, %v1176_v44  ;;  %v350_v58 = vadd.s32 4294967256, %v317_v43  ;;  %v357_v7 = vadd.s32 4294967248, %v317_v43  ;;  %s1246_s15 = scalar_lea.hbm %s1301_s5, %s773_s23  ;;  %p858_p6 = scmp.ne.s32.totalorder %s1248_s11, %s857_s7 }
  0x40   : > { %271 = vadd.xlane.f32.xlu1 %v270_v11  ;;  %v756_v29 = vpack.c.bf16 %v298_v28, %v297_v27  ;;  %v759_v33 = vpack.c.bf16 %v300_v32, %v299_v31  ;;  %v302_v35 = vld [vmem:[%s1297_s1 + $0x28] sm:$0xff]  ;;  %v303_v37 = vld [vmem:[%s1297_s1 + $0x30] sm:$0xff]  ;;  %v304_v38 = vld [vmem:[%s1297_s1 + $0x38] sm:$0xff]  ;;  %v346_v3 = vsub.s32 %v343_v53, %v1176_v44  ;;  %vm376_vm8 = vcmask 589312   ;;  %p1307_p11 = scmp.ne.s32.totalorder %s1304_s29, 0  ;;  %s931_s6 = smov [#allocation5]  }
  0x41   : > { %v762_v36 = vpack.c.bf16 %v302_v35, %v301_v34  ;;  %v765_v39 = vpack.c.bf16 %v304_v38, %v303_v37  ;;  %v305_v40 = vld [vmem:[%s1297_s1 + $0x40] sm:$0xff]  ;;  %v360_v32 = vsub.s32 %v357_v7, %v1176_v44  ;;  %vm378_vm9 = vcmask 588800   ;;  %s861_s8 = sshll.u32 %s931_s6, 4  ;;  %s862_s8 = int_to_ptr.vmem [resolvable:$false] %s861_s8 }
  0x42   : > { %757 = vmatpush3.bf16.msra.mxu0 %v756_v29  ;;  %v452_v53 = vld [vmem:[%s1299_s3] sm:$0xff]  ;;  %vm460_vm10 = vcmask 1043456   ;;  %vm456_vm11 = vcmask 162816   ;;  %p859_p12 = pnand %p858_p6, %p1307_p11  ;;  %s863_s9 = scalar_lea.vmem %s862_s8, 4608 }
  0x43   : > { %274 = vadd.xlane.f32.xlu0 %v273_v16  ;;  %758 = vmatprep.subr.bf16.mxu0 %v928_v30  ;;  %p864_p8 = scmp.lt.s32.totalorder %s1248_s11, %s862_s8  ;;  %p865_p10 = scmp.lt.s32.totalorder %s863_s9, %s857_s7 }
  0x44   : > { %277 = vadd.xlane.f32.xlu1 %v276_v17  ;;  %v353_v17 = vsub.s32 %v350_v58, %v1176_v44  ;;  %p860_p13 = pneg %p859_p12 }
  0x45   : > { %p866_p0 = por %p865_p10, %p864_p8 }
  0x46   : > { %760 = vmatpush3.bf16.msra.mxu0 %v759_v33  ;;  %v371_v33 = vadd.s32 4294967232, %v317_v43 }
  0x47   : > { %280 = vadd.xlane.f32.xlu0 %v279_v22  ;;  %761 = vmatprep.subr.bf16.mxu0 %v928_v30  ;;  %v364_v22 = vadd.s32 4294967240, %v317_v43  ;;  %p867_p2 = pnand %p866_p0, %p860_p13 }
  0x48   : > { %283 = vadd.xlane.f32.xlu1 %v282_v23  ;;  %v374_v45 = vsub.s32 %v371_v33, %v1176_v44 }
  0x4a   : > { %763 = vmatpush3.bf16.msra.mxu0 %v762_v36  ;;  %v367_v36 = vsub.s32 %v364_v22, %v1176_v44 }
  0x4b   : > { %286 = vadd.xlane.f32.xlu0 %v285_v26  ;;  %764 = vmatprep.subr.bf16.mxu0 %v928_v30 }
  0x4e   : > { %766 = vmatpush3.bf16.msra.mxu0 %v765_v39 }
  0x4f   : > { %741 = vmatprep.subr.mxu0 %v929_v41 }
  0x52   : > { %742 = vmatpush3.msra.mxu0 %v305_v40 }
  0xc8   : > { %v263_v46 = vpop.xlane.xlu0 %262 }
  0xc9   : > { %v269_v49 = vpop.xlane.xlu1 %268  ;;  %v288_v51 = vmul.f32 0.00390625, %v263_v46 }
  0xca   : > { %v290_v55 = vmul.f32 0.00390625, %v269_v49 }
  0xcb   : > { %v321_v62 = vrot.slane %v288_v51, %v320_v50 }
  0xcc   : > { %v266_v56 = vpop.xlane.xlu0 %265  ;;  %v333_v10 = vrot.slane %v290_v55, %v332_v54  ;;  %v453_v54 = vld [vmem:[%s1299_s3 + $0x8] sm:$0xff] }
  0xcd   : > { %v289_v59 = vmul.f32 0.00390625, %v266_v56  ;;  %v272_v60 = vpop.xlane.xlu1 %271  ;;  %v768_v55 = vpack.c.bf16 %v453_v54, %v452_v53  ;;  %v454_v56 = vld [vmem:[%s1299_s3 + $0x10] sm:$0xf] }
  0xce   : > { %v291_v61 = vmul.f32 0.00390625, %v272_v60 }
  0xcf   : > { %v326_v63 = vrot.slane %v289_v59, %v325_v52  ;;  %769 = vmatpush3.bf16.msra.mxu1 %v768_v55 }
  0xd0   : > { %v340_v11 = vrot.slane %v291_v61, %v339_v57  ;;  %v275_v16 = vpop.xlane.xlu0 %274  ;;  %750 = vmatprep.subr.mxu1 %v929_v41  ;;  %v306_v57 = vld [vmem:[%s1298_s2] sm:$0x1] }
  0xd1   : > { %v328_v23 = vsel %vm327_vm1, %v326_v63, %v321_v62  ;;  %v292_v26 = vmul.f32 0.00390625, %v275_v16  ;;  %v278_v27 = vpop.xlane.xlu1 %277  ;;  %v455_v41 = vld [vmem:[%s1300_s4] sm:$0x1]  ;;  %v540_v16 = vsub.s32 0, %v1176_v44 }
  0xd2   : > { %v335_v28 = vsel %vm334_vm2, %v333_v10, %v328_v23  ;;  %v293_v29 = vmul.f32 0.00390625, %v278_v27 }
  0xd3   : > { %v342_v30 = vsel %vm341_vm3, %v340_v11, %v335_v28  ;;  %v347_v31 = vrot.slane %v292_v26, %v346_v3  ;;  %751 = vmatpush3.msk.msra.mxu1 %vm460_vm10, %v454_v56 }
  0xd4   : > { %v354_v34 = vrot.slane %v293_v29, %v353_v17  ;;  %v281_v35 = vpop.xlane.xlu0 %280 }
  0xd5   : > { %v349_v37 = vsel %vm348_vm4, %v347_v31, %v342_v30  ;;  %v294_v38 = vmul.f32 0.00390625, %v281_v35  ;;  %v284_v39 = vpop.xlane.xlu1 %283 }
  0xd6   : > { %v295_v40 = vmul.f32 0.00390625, %v284_v39  ;;  %v356_v46 = vsel %vm355_vm5, %v354_v34, %v349_v37 }
  0xd7   : > { %v361_v42 = vrot.slane %v294_v38, %v360_v32 }
  0xd8   : > { %v368_v47 = vrot.slane %v295_v40, %v367_v36  ;;  %v287_v48 = vpop.xlane.xlu0 %286 }
  0xd9   : > { %v363_v49 = vsel %vm362_vm6, %v361_v42, %v356_v46  ;;  %v296_v50 = vmul.f32 0.00390625, %v287_v48 }
  0xda   : > { %v370_v51 = vsel %vm369_vm7, %v368_v47, %v363_v49 }
  0xdb   : > { %v375_v43 = vrot.slane %v296_v50, %v374_v45 }
  0xdd   : > { %v377_v52 = vsel %vm376_vm8, %v375_v43, %v370_v51 }
  0xde   : > { %744 = vmatmul.mubr.msk.f32.vlgmr.msra.gmra.mrb[0].mxu0 %vm378_vm9, %v377_v52 }
 0x1b1   : > { %v447_v58 = vpop.f32.mrb[0].mxu0 }
 0x1b2   : > { %v448_v59 = vadd.f32 %v447_v58, %v306_v57  ;;  %v745_v60 = vpop.f32.mrb[1].mxu0 }
 0x1b4   : > { %v451_v61 = vmax.f32 %v448_v59, 0.0 }
 0x1b6   : > { %753 = vmatmul.mubr.msk.f32.vlgmr.msra.gmra.mrb[0].mxu1 %vm456_vm11, %v451_v61 }
 0x289   : > { %v530_v62 = vpop.f32.mrb[0].mxu1 }
 0x28a   : > { %v531_v63 = vadd.f32 %v530_v62, %v455_v41  ;;  %v754_v3 = vpop.f32.mrb[1].mxu1 }
 0x28c   : > { %v534_v7 = vadd.f32 3.0, %v531_v63 }
 0x28e   : > { %v535_v10 = vmax.f32 %v534_v7, 0.0 }
 0x290   : > { %v536_v11 = vmin.f32 %v535_v10, 6.0 }
 0x292   : > { %v537_v17 = vmul.f32 0.16666667, %v536_v11 }
 0x294   : > { %v541_v22 = vrot.slane %v537_v17, %v540_v16 }
 0x296   : > { %547 = vbcast.lane.b32.xlu0 %v541_v22, 264  ;;  %543 = vbcast.lane.b32.xlu1 %v541_v22, 256 }
 0x29a   : > { %563 = vbcast.lane.b32.xlu0 %v541_v22, 296  ;;  %551 = vbcast.lane.b32.xlu1 %v541_v22, 272 }
 0x29e   : > { %571 = vbcast.lane.b32.xlu0 %v541_v22, 312  ;;  %555 = vbcast.lane.b32.xlu1 %v541_v22, 280 }
 0x2a2   : > { %559 = vbcast.lane.b32.xlu1 %v541_v22, 288 }
 0x2a6   : > { %567 = vbcast.lane.b32.xlu1 %v541_v22, 304 }
 0x2aa   : > { %575 = vbcast.lane.b32.xlu1 %v541_v22, 320 }
 0x308   : > { %v548_v23 = vpop.permute.xlu0 %547  ;;  %v544_v26 = vpop.permute.xlu1 %543 }
 0x309   : > { %v579_v27 = vmul.f32 %v548_v23, %v1089_v5  ;;  %v580_v28 = vmul.f32 %v548_v23, %v1092_v6  ;;  %v577_v44 = vmul.f32 %v544_v26, %v1075_v0  ;;  %v578_v29 = vmul.f32 %v544_v26, %v1078_v1 }
 0x30b   : > { %597 = vst [vmem:[%s1211_s28 + $0x10] sm:$0xff] %v579_v27  ;;  %598 = vst [vmem:[%s1211_s28 + $0x18] sm:$0xff] %v580_v28 }
 0x30c   : > { %595 = vst [vmem:[%s1211_s28] sm:$0xff] %v577_v44  ;;  %596 = vst [vmem:[%s1211_s28 + $0x8] sm:$0xff] %v578_v29  ;;  %v564_v5 = vpop.permute.xlu0 %563  ;;  %v552_v0 = vpop.permute.xlu1 %551 }
 0x30d   : > { %v587_v1 = vmul.f32 %v564_v5, %v1113_v14  ;;  %v588_v6 = vmul.f32 %v564_v5, %v1116_v15  ;;  %v581_v30 = vmul.f32 %v552_v0, %v1081_v2  ;;  %v582_v31 = vmul.f32 %v552_v0, %v1086_v4 }
 0x30f   : > { %605 = vst [vmem:[%s1211_s28 + $0x50] sm:$0xff] %v587_v1  ;;  %606 = vst [vmem:[%s1211_s28 + $0x58] sm:$0xff] %v588_v6 }
 0x310   : > { %599 = vst [vmem:[%s1211_s28 + $0x20] sm:$0xff] %v581_v30  ;;  %600 = vst [vmem:[%s1211_s28 + $0x28] sm:$0xff] %v582_v31  ;;  %v572_v32 = vpop.permute.xlu0 %571  ;;  %v556_v33 = vpop.permute.xlu1 %555 }
 0x311   : > { %v591_v34 = vmul.f32 %v572_v32, %v1129_v20  ;;  %v592_v14 = vmul.f32 %v572_v32, %v1132_v21  ;;  %v583_v15 = vmul.f32 %v556_v33, %v1097_v8  ;;  %v584_v2 = vmul.f32 %v556_v33, %v1100_v9 }
 0x313   : > { %609 = vst [vmem:[%s1211_s28 + $0x70] sm:$0xff] %v591_v34  ;;  %610 = vst [vmem:[%s1211_s28 + $0x78] sm:$0xff] %v592_v14 }
 0x314   : > { %601 = vst [vmem:[%s1211_s28 + $0x30] sm:$0xff] %v583_v15  ;;  %602 = vst [vmem:[%s1211_s28 + $0x38] sm:$0xff] %v584_v2  ;;  %v560_v4 = vpop.permute.xlu1 %559 }
 0x315   : > { %v585_v35 = vmul.f32 %v560_v4, %v1107_v12  ;;  %v586_v36 = vmul.f32 %v560_v4, %v1110_v13 }
 0x317   : > { %603 = vst [vmem:[%s1211_s28 + $0x40] sm:$0xff] %v585_v35  ;;  %604 = vst [vmem:[%s1211_s28 + $0x48] sm:$0xff] %v586_v36 }
 0x318   : > { %v568_v20 = vpop.permute.xlu1 %567 }
 0x319   : > { %v589_v8 = vmul.f32 %v568_v20, %v1123_v18  ;;  %v590_v9 = vmul.f32 %v568_v20, %v1126_v19 }
 0x31b   : > { %607 = vst [vmem:[%s1211_s28 + $0x60] sm:$0xff] %v589_v8  ;;  %608 = vst [vmem:[%s1211_s28 + $0x68] sm:$0xff] %v590_v9 }
 0x31c   : > { %v576_v21 = vpop.permute.xlu1 %575 }
 0x31d   : > { %v593_v12 = vmul.f32 %v576_v21, %v1139_v24  ;;  %v594_v13 = vmul.f32 %v576_v21, %v1142_v25 }
 0x31f   : > { %611 = vst [vmem:[%s1211_s28 + $0x80] sm:$0xff] %v593_v12  ;;  %612 = vst [vmem:[%s1211_s28 + $0x88] sm:$0xff] %v594_v13 }
 0x320   : > { %870 = shalt.err (!%p867_p2)
}
 0x321   : > { %s871_s10 = scalar_lea.hbm %s1246_s15, 2304  ;;  %s875_s25 = scalar_lea.hbm %s1301_s5, 4608 }
 0x322   : > { %p872_p4 = scmp.ne.s32.totalorder %s1246_s15, %s871_s10  ;;  %p876_p9 = scmp.lt.u32.totalorder %s1246_s15, %s1301_s5 }
 0x323   : > { %p877_p1 = scmp.lt.u32.totalorder %s875_s25, %s871_s10  ;;  %p879_p6 = scmp.lt.u32.totalorder %s871_s10, %s1246_s15 }
 0x324   : > { %p873_p5 = pnand %p872_p4, %p1307_p11 }
 0x325   : > { %p878_p3 = por %p877_p1, %p876_p9 }
 0x326   : > { %p874_p7 = pneg %p873_p5 }
 0x327   : > { %p880_p12 = por %p879_p6, %p878_p3 }
 0x329   : > { %p881_p13 = pnand %p880_p12, %p874_p7 }
 0x32b   : > { %884 = shalt.err (!%p881_p13)
}
 0x32c   : > { %s932_s23 = smov 256   ;;  %s933_s12 = smov 16  }
 0x32d   : > { %776 = dma.vmem_to_hbm [thread:$0]  (%p1307_p11), %s1248_s11, 2304, %s1246_s15, %s614_s22, %s932_s23, %s932_s23, %s933_s12  }
 0x32e PF: > { %s642_s14 = sand.u32 1, %s911_s18   ;;  %p1308_p8 = scmp.ne.s32.totalorder %s1305_s30, 0 }
 0x32f   : > { %p1309_p10 = scmp.ge.s32.totalorder %s923_s21, 2  ;;  %s643_s7 = scalar_lea.sflag [#allocation4], %s642_s14 }
 0x331   : > { %p783_p0 = pnand %p1309_p10, %p1308_p8 }
 0x333   : > { %906 = dma.done.wait (!%p783_p0), %s643_s7, 2304  }
 0x334   : > { %908 = vsyncadd (!%p783_p0), %s643_s7, 4294964992  ;;  %p18_p2 = scmp.ge.s32.totalorder %s989_s24, 4   ;;  %s1310_s18 = smov %s915_s19 }
 0x335   : > { %s1311_s19 = smov %s919_s20  ;;  %s1312_s20 = smov %s1001_s27 }
 0x336   : > { %s1313_s21 = smov %s989_s24  ;;  %20 = sbr.rel (!%p18_p2) target bundleno = 5 (0x5), region = 85 }
 0x33d   :  { %648 = vsyncpa [#allocation3], 1 }
 0x33e   :  { %650 = vsyncpa [#allocation3 + $0x1], 1 }
 0x33f   :  { %651 = vsyncpa [#allocation4], 1 }
 0x340   :  { %653 = vsyncpa [#allocation4 + $0x1], 1 }

</bundles_post_ra>
